<compile_context>
chip_gen: v5e
topology: v5e:2x2
jax: 0.10.0
libtpu: 0.0.40
codegen_flags: <defaults>
</compile_context>

<pallas_src>
import functools
import math

import jax
import jax.numpy as jnp
from jax.experimental import pallas as pl
from jax.experimental.pallas import tpu as pltpu


def _round_up(x, m):
    return ((x + m - 1) // m) * m


def _upconv1d_kernel(x_ref, g_ref, w_ref, b_ref, o_ref, col_ref, *,
                     nb, c_in_pad, kernel_size, l_out_pad):
    """One batch-group (nb batch elements) per grid step.

    x_ref:   (nb*C_in_pad, L)            original input, rows = (b, ci)
    g_ref:   (L, K*L_out_pad)            resident 0/1 gather (upsample+pad+tap+stride)
    w_ref:   (C_out_pad, K*C_in_pad)     flattened conv weight, col = k*C_in_pad + ci
    b_ref:   (C_out_pad, 1)              conv bias (zero padded)
    o_ref:   (C_out_pad, nb*L_out_pad)   packed output, col = b_local*L_out_pad + o
    col_ref: (K*C_in_pad, nb*L_out_pad)  VMEM scratch holding the im2col block
    """
    # One batched MXU matmul builds every tap of every batch in the group.
    taps = jnp.dot(x_ref[...], g_ref[...],
                   preferred_element_type=jnp.float32)   # (nb*C_in_pad, K*L_out_pad)
    taps = taps.astype(col_ref.dtype)

    # Re-tile (b, ci) x (k, o)  ->  (k, ci) x (b, o).  Every slab is an
    # (8, 128)-aligned block (c_in_pad % 8 == 0, l_out_pad % 128 == 0), so all
    # stores are full-tile unmasked vst's.
    for b in range(nb):
        for k in range(kernel_size):
            col_ref[k * c_in_pad:(k + 1) * c_in_pad,
                    b * l_out_pad:(b + 1) * l_out_pad] = (
                taps[b * c_in_pad:(b + 1) * c_in_pad,
                     k * l_out_pad:(k + 1) * l_out_pad])

    # Single im2col matmul + bias.
    out = jnp.dot(w_ref[...], col_ref[...],
                  preferred_element_type=jnp.float32) + b_ref[...]
    o_ref[...] = out.astype(o_ref.dtype)


class UpsamplingConvo1D:
    """JAX/Pallas port of the PyTorch UpsamplingConvo1D module (NCL layout)."""

    def __init__(self, in_channels, out_channels, upsample, kernel_size, stride,
                 padding, *, key, compute_dtype=jnp.float32):
        assert int(upsample) == upsample, "only integer nearest-upsample supported"
        self.in_channels = in_channels
        self.out_channels = out_channels
        self.upsample = int(upsample)
        self.kernel_size = kernel_size
        self.stride = stride
        self.padding = padding
        # PyTorch names this "reflection_pad" but uses ConstantPad1d(value=0),
        # i.e. it is a zero pad of kernel_size // 2 on each side.
        self.zero_pad = kernel_size // 2
        # f32 by default (exact vs. the 1e-5 reference check). Use bfloat16 on
        # v6e/v7x for ~2x MXU and half the VMEM (relax the test tolerance).
        self.compute_dtype = compute_dtype

        # Deterministic init matching PyTorch Conv1d default (uniform +/- 1/sqrt(fan_in)).
        k_w, k_b = jax.random.split(key)
        bound = 1.0 / math.sqrt(in_channels * kernel_size)
        self.weight = jax.random.uniform(
            k_w, (out_channels, in_channels, kernel_size),
            minval=-bound, maxval=bound, dtype=jnp.float32)
        self.bias = jax.random.uniform(
            k_b, (out_channels,), minval=-bound, maxval=bound, dtype=jnp.float32)

    def __call__(self, x):
        # x: (N, C_in, L) float32
        n, c_in, l = x.shape
        assert c_in == self.in_channels

        up = self.upsample
        k_sz = self.kernel_size
        stride = self.stride
        total_pad = self.zero_pad + self.padding          # both are zero pads
        l_total = l * up + 2 * total_pad
        l_out = (l_total - k_sz) // stride + 1
        assert l_out >= 1

        c_out = self.out_channels
        c_in_pad = _round_up(c_in, 8)                     # full sublane tiles
        c_out_pad = _round_up(c_out, 8)
        l_out_pad = _round_up(l_out, 128)                 # full lane tiles per batch

        cdt = self.compute_dtype

        # ---- resident operands built once in plain JAX (layout plumbing) ----
        # Gather matrix fusing nearest-upsample + zero pad + tap shift + stride:
        #   g[i, k*L_out_pad + o] = 1  iff  0 <= o*stride + k - total_pad - i*up < up
        i_idx = jnp.arange(l, dtype=jnp.int32)[:, None, None]
        k_idx = jnp.arange(k_sz, dtype=jnp.int32)[None, :, None]
        o_idx = jnp.arange(l_out_pad, dtype=jnp.int32)[None, None, :]
        d = o_idx * stride + k_idx - total_pad - i_idx * up
        g_all = (((d >= 0) & (d < up) & (o_idx < l_out))
                 .astype(cdt).reshape(l, k_sz * l_out_pad))

        # Lane-dense flattened weight: w_flat[co, k*C_in_pad + ci] = W[co, ci, k]
        w_pad = jnp.pad(self.weight,
                        ((0, c_out_pad - c_out), (0, c_in_pad - c_in), (0, 0)))
        w_flat = jnp.transpose(w_pad, (0, 2, 1)).reshape(
            c_out_pad, k_sz * c_in_pad).astype(cdt)
        b_col = jnp.pad(self.bias, (0, c_out_pad - c_out)).reshape(
            c_out_pad, 1).astype(jnp.float32)

        # Batch packed onto sublanes: (N*C_in_pad, L), rows b-major / ci-minor.
        x_flat = jnp.pad(x, ((0, 0), (0, c_in_pad - c_in), (0, 0))).reshape(
            n * c_in_pad, l).astype(cdt)

        # ---- batch-group size: largest divisor of N that fits the VMEM budget,
        #      capped so the "parallel" grid has >= 2 steps when N allows
        #      (v7x has 2 TensorCores; no effect on v5e/v6e). ----
        itemsize = jnp.dtype(cdt).itemsize

        def footprint(nb):
            x_blk = 2 * nb * c_in_pad * l * itemsize               # double-buffered
            g_buf = 2 * l * k_sz * l_out_pad * itemsize            # resident
            w_buf = 2 * c_out_pad * k_sz * c_in_pad * itemsize
            b_buf = 2 * c_out_pad * 128 * 4
            o_blk = 2 * c_out_pad * nb * l_out_pad * 4
            col = k_sz * c_in_pad * nb * l_out_pad * itemsize
            return x_blk + g_buf + w_buf + b_buf + o_blk + col

        budget = 40 * 1024 * 1024          # conservative: v7x has 64 MiB VMEM / TC
        cap = max(1, n // 2)
        nb = 1
        for cand in range(cap, 0, -1):
            if n % cand == 0 and footprint(cand) <= budget:
                nb = cand
                break

        vmem_limit = min(max(footprint(nb) + (4 << 20), 32 << 20), 64 << 20)

        kernel = functools.partial(
            _upconv1d_kernel, nb=nb, c_in_pad=c_in_pad,
            kernel_size=k_sz, l_out_pad=l_out_pad)

        out_packed = pl.pallas_call(
            kernel,
            out_shape=jax.ShapeDtypeStruct((c_out_pad, n * l_out_pad), jnp.float32),
            grid_spec=pltpu.PrefetchScalarGridSpec(
                num_scalar_prefetch=0,
                grid=(n // nb,),
                in_specs=[
                    # one batch-group of the ORIGINAL (non-upsampled) input per step
                    pl.BlockSpec((nb * c_in_pad, l), lambda g: (g, 0)),
                    # gather / weight / bias: resident, same block every step
                    pl.BlockSpec((l, k_sz * l_out_pad), lambda g: (0, 0)),
                    pl.BlockSpec((c_out_pad, k_sz * c_in_pad), lambda g: (0, 0)),
                    pl.BlockSpec((c_out_pad, 1), lambda g: (0, 0)),
                ],
                out_specs=pl.BlockSpec((c_out_pad, nb * l_out_pad),
                                       lambda g: (0, g)),
                scratch_shapes=[
                    pltpu.VMEM((k_sz * c_in_pad, nb * l_out_pad), cdt),
                ],
            ),
            compiler_params=pltpu.CompilerParams(
                dimension_semantics=("parallel",),
                vmem_limit_bytes=vmem_limit),
        )(x_flat, g_all, w_flat, b_col)

        # Unpack (C_out_pad, N*L_out_pad) -> (N, C_out, L_out): pure-JAX plumbing.
        out = out_packed.reshape(c_out_pad, n, l_out_pad)
        return jnp.transpose(out, (1, 0, 2))[:, :c_out, :l_out]


def _reference(module, x):
    """Pure-JAX reference for the same forward pass."""
    x_up = jnp.repeat(x, module.upsample, axis=-1)
    total_pad = module.zero_pad + module.padding
    x_pad = jnp.pad(x_up, ((0, 0), (0, 0), (total_pad, total_pad)))
    out = jax.lax.conv_general_dilated(
        x_pad, module.weight,
        window_strides=(module.stride,),
        padding="VALID",
        dimension_numbers=("NCH", "OIH", "NCH"),
    )
    return out + module.bias.reshape(1, -1, 1)


if __name__ == "__main__":
    key = jax.random.PRNGKey(0)
    k1, k2, kx1, kx2 = jax.random.split(key, 4)

    # Config 1: stride=1 (typical DiffWave upsampling-conv usage).
    m1 = UpsamplingConvo1D(4, 8, upsample=4, kernel_size=5, stride=1, padding=0,
                           key=k1)
    x1 = jax.random.normal(kx1, (2, 4, 16), dtype=jnp.float32)
    out1 = jax.block_until_ready(m1(x1))
    ref1 = jax.block_until_ready(_reference(m1, x1))
    assert out1.shape == ref1.shape, (out1.shape, ref1.shape)
    assert jnp.allclose(out1, ref1, atol=1e-5, rtol=1e-5), "mismatch (config 1)"

    # Config 2: stride=2 + conv padding, nb>1 batch grouping, odd channel count.
    m2 = UpsamplingConvo1D(3, 6, upsample=2, kernel_size=3, stride=2, padding=1,
                           key=k2)
    x2 = jax.random.normal(kx2, (4, 3, 12), dtype=jnp.float32)
    out2 = jax.block_until_ready(m2(x2))
    ref2 = jax.block_until_ready(_reference(m2, x2))
    assert out2.shape == ref2.shape, (out2.shape, ref2.shape)
    assert jnp.allclose(out2, ref2, atol=1e-5, rtol=1e-5), "mismatch (config 2)"

    print("KERNEL_OK")
</pallas_src>

<mosaic_0001>
module attributes {stable_mosaic.version = 11 : i64} {
  func.func @_upconv1d_kernel(%arg0: i32, %arg1: memref<8x16xf32, #tpu.memory_space<vmem>>, %arg2: memref<16x640xf32, #tpu.memory_space<vmem>>, %arg3: memref<8x40xf32, #tpu.memory_space<vmem>>, %arg4: memref<8x1xf32, #tpu.memory_space<vmem>>, %arg5: memref<8x128xf32, #tpu.memory_space<vmem>>, %arg6: memref<40x128xf32, #tpu.memory_space<vmem>>) attributes {dimension_semantics = [#tpu.dimension_semantics<parallel>], iteration_bounds = array<i64: 2>, scalar_prefetch = 0 : i64, scratch_operands = 1 : i64, tpu.core_type = #tpu.core_type<tc>, window_params = [{transform_indices = @transform_0, window_bounds = array<i64: 8, 16>}, {pipeline_mode = #tpu.pipeline_mode<synchronous>, transform_indices = @transform_1, window_bounds = array<i64: 16, 640>}, {pipeline_mode = #tpu.pipeline_mode<synchronous>, transform_indices = @transform_2, window_bounds = array<i64: 8, 40>}, {pipeline_mode = #tpu.pipeline_mode<synchronous>, transform_indices = @transform_3, window_bounds = array<i64: 8, 1>}, {transform_indices = @transform_4, window_bounds = array<i64: 8, 128>}]} {
    %c0 = arith.constant 0 : index
    %c0_0 = arith.constant 0 : index
    %0 = vector.load %arg1[%c0, %c0_0] : memref<8x16xf32, #tpu.memory_space<vmem>>, vector<8x16xf32>
    %c0_1 = arith.constant 0 : index
    %c0_2 = arith.constant 0 : index
    %1 = vector.load %arg2[%c0_1, %c0_2] : memref<16x640xf32, #tpu.memory_space<vmem>>, vector<16x640xf32>
    %cst = arith.constant dense<0.000000e+00> : vector<8x640xf32>
    %2 = tpu.matmul %0, %1, %cst {dimension_numbers = #tpu.dot_dimension_numbers<[1], [0], [0], [1], [0, 0, 1, 1], [], []>} : vector<8x16xf32>, vector<16x640xf32>, vector<8x640xf32> -> vector<8x640xf32>
    %3 = vector.extract_strided_slice %2 {offsets = [0, 0], sizes = [8, 128], strides = [1, 1]} : vector<8x640xf32> to vector<8x128xf32>
    %c0_3 = arith.constant 0 : index
    %c0_4 = arith.constant 0 : index
    %4 = vector.load %arg6[%c0_3, %c0_4] : memref<40x128xf32, #tpu.memory_space<vmem>>, vector<8x128xf32>
    tpu.vector_store %arg6[%c0_3, %c0_4], %3 {strides = array<i32>} : memref<40x128xf32, #tpu.memory_space<vmem>>, vector<8x128xf32>,
    %5 = vector.extract_strided_slice %2 {offsets = [0, 128], sizes = [8, 128], strides = [1, 1]} : vector<8x640xf32> to vector<8x128xf32>
    %c8 = arith.constant 8 : index
    %c0_5 = arith.constant 0 : index
    %6 = vector.load %arg6[%c8, %c0_5] : memref<40x128xf32, #tpu.memory_space<vmem>>, vector<8x128xf32>
    tpu.vector_store %arg6[%c8, %c0_5], %5 {strides = array<i32>} : memref<40x128xf32, #tpu.memory_space<vmem>>, vector<8x128xf32>,
    %7 = vector.extract_strided_slice %2 {offsets = [0, 256], sizes = [8, 128], strides = [1, 1]} : vector<8x640xf32> to vector<8x128xf32>
    %c16 = arith.constant 16 : index
    %c0_6 = arith.constant 0 : index
    %8 = vector.load %arg6[%c16, %c0_6] : memref<40x128xf32, #tpu.memory_space<vmem>>, vector<8x128xf32>
    tpu.vector_store %arg6[%c16, %c0_6], %7 {strides = array<i32>} : memref<40x128xf32, #tpu.memory_space<vmem>>, vector<8x128xf32>,
    %9 = vector.extract_strided_slice %2 {offsets = [0, 384], sizes = [8, 128], strides = [1, 1]} : vector<8x640xf32> to vector<8x128xf32>
    %c24 = arith.constant 24 : index
    %c0_7 = arith.constant 0 : index
    %10 = vector.load %arg6[%c24, %c0_7] : memref<40x128xf32, #tpu.memory_space<vmem>>, vector<8x128xf32>
    tpu.vector_store %arg6[%c24, %c0_7], %9 {strides = array<i32>} : memref<40x128xf32, #tpu.memory_space<vmem>>, vector<8x128xf32>,
    %11 = vector.extract_strided_slice %2 {offsets = [0, 512], sizes = [8, 128], strides = [1, 1]} : vector<8x640xf32> to vector<8x128xf32>
    %c32 = arith.constant 32 : index
    %c0_8 = arith.constant 0 : index
    %12 = vector.load %arg6[%c32, %c0_8] : memref<40x128xf32, #tpu.memory_space<vmem>>, vector<8x128xf32>
    tpu.vector_store %arg6[%c32, %c0_8], %11 {strides = array<i32>} : memref<40x128xf32, #tpu.memory_space<vmem>>, vector<8x128xf32>,
    %c0_9 = arith.constant 0 : index
    %c0_10 = arith.constant 0 : index
    %13 = vector.load %arg3[%c0_9, %c0_10] : memref<8x40xf32, #tpu.memory_space<vmem>>, vector<8x40xf32>
    %c0_11 = arith.constant 0 : index
    %c0_12 = arith.constant 0 : index
    %14 = vector.load %arg6[%c0_11, %c0_12] : memref<40x128xf32, #tpu.memory_space<vmem>>, vector<40x128xf32>
    %cst_13 = arith.constant dense<0.000000e+00> : vector<8x128xf32>
    %15 = tpu.matmul %13, %14, %cst_13 {dimension_numbers = #tpu.dot_dimension_numbers<[1], [0], [0], [1], [0, 0, 1, 1], [], []>} : vector<8x40xf32>, vector<40x128xf32>, vector<8x128xf32> -> vector<8x128xf32>
    %c0_14 = arith.constant 0 : index
    %c0_15 = arith.constant 0 : index
    %16 = vector.load %arg4[%c0_14, %c0_15] : memref<8x1xf32, #tpu.memory_space<vmem>>, vector<8x1xf32>
    %17 = vector.broadcast %16 : vector<8x1xf32> to vector<8x128xf32>
    %18 = arith.addf %15, %17 : vector<8x128xf32>
    %c0_16 = arith.constant 0 : index
    %c0_17 = arith.constant 0 : index
    %19 = vector.load %arg5[%c0_16, %c0_17] : memref<8x128xf32, #tpu.memory_space<vmem>>, vector<8x128xf32>
    tpu.vector_store %arg5[%c0_16, %c0_17], %18 {strides = array<i32>} : memref<8x128xf32, #tpu.memory_space<vmem>>, vector<8x128xf32>,
    return
  }
  func.func @transform_0(%arg0: i32) -> (i32, i32) {
    %c0_i32 = arith.constant 0 : i32
    %c0_i32_0 = arith.constant 0 : i32
    return %arg0, %c0_i32 : i32, i32
  }
  func.func @transform_1(%arg0: i32) -> (i32, i32) {
    %c0_i32 = arith.constant 0 : i32
    %c0_i32_0 = arith.constant 0 : i32
    %c0_i32_1 = arith.constant 0 : i32
    return %c0_i32, %c0_i32_0 : i32, i32
  }
  func.func @transform_2(%arg0: i32) -> (i32, i32) {
    %c0_i32 = arith.constant 0 : i32
    %c0_i32_0 = arith.constant 0 : i32
    %c0_i32_1 = arith.constant 0 : i32
    return %c0_i32, %c0_i32_0 : i32, i32
  }
  func.func @transform_3(%arg0: i32) -> (i32, i32) {
    %c0_i32 = arith.constant 0 : i32
    %c0_i32_0 = arith.constant 0 : i32
    %c0_i32_1 = arith.constant 0 : i32
    return %c0_i32, %c0_i32_0 : i32, i32
  }
  func.func @transform_4(%arg0: i32) -> (i32, i32) {
    %c0_i32 = arith.constant 0 : i32
    %c0_i32_0 = arith.constant 0 : i32
    return %c0_i32, %arg0 : i32, i32
  }
}

</mosaic_0001>

<bundles_post_ra>
// kernel: tpu_custom_call.1
= control target key start
LH: loop header
LB: loop body
LE: loop exit
PB: predicated region body
PF: predicated region fallthrough
CT: control target
= control target key end

     0   :  { %9 = vsyncpa [#allocation4], 0  ;;  %s878_s0 = inlined_call_operand.hbm [shape: f32[16,16], index: 0, kind: input, shape index: {}]   ;;  %s879_s1 = inlined_call_operand.hbm [shape: f32[16,640], index: 1, kind: input, shape index: {}]   ;;  %s880_s2 = inlined_call_operand.vmem [shape: f32[8,40], index: 2, kind: input, shape index: {}]   ;;  %s881_s3 = inlined_call_operand.vmem [shape: f32[8,1], index: 3, kind: input, shape index: {}]   ;;  %s882_s4 = inlined_call_operand.hbm [shape: f32[8,256], index: 4, kind: output, shape index: {}]  }
   0x1   :  { %11 = vsyncpa [#allocation4 + $0x1], 0 }
   0x2   :  { %12 = vsyncpa [#allocation7], 0 }
   0x3   :  { %13 = vsyncpa [#allocation5], 0 }
   0x4   :  { %15 = vsyncpa [#allocation5 + $0x1], 0  ;;  %s727_s15 = smov 0   ;;  %s729_s16 = smov 0  }
   0x5   :  { %s731_s17 = smov 0   ;;  %s733_s18 = smov 0  }
   0x6 LB: > { %s152_s21 = sshll.u32 %s879_s1, 4  ;;  %s751_s22 = sadd.s32 4294967295, %s696_s18   ;;  %s696_s18 = sphi %s733_s18, %s892_s18   ;;  %s692_s17 = sphi %s731_s17, %s891_s17   ;;  %s688_s16 = sphi %s729_s16, %s890_s16   ;;  %s684_s15 = sphi %s727_s15, %s889_s15   ;;  %s153_s21 = int_to_ptr.hbm [resolvable:$true] %s152_s21 }
   0x7   : > { %p486_p0 = scmp.ge.s32.totalorder %s696_s18, 1  ;;  %p42_p1 = scmp.eq.s32.totalorder %s751_s22, 0 }
   0x8   : > { %p141_p2 = scmp.lt.s32.totalorder %s696_s18, 3  ;;  %s698_s24 = smov [#allocation6]  }
   0x9   : > { %s154_s25 = sshll.u32 %s698_s24, 4  ;;  %s699_s26 = smov 640   ;;  %s155_s25 = int_to_ptr.vmem [resolvable:$true] %s154_s25 }
   0xa   : > { %p756_p3 = pnand %p486_p0, %p141_p2  ;;  %s700_s27 = smov 40  }
   0xb   : > { %s485_s28 = sadd.s32 4294967294, %s696_s18   ;;  %s767_s29 = sadd.s32 1, %s696_s18  }
   0xc   : > { %p513_p4 = pneg %p756_p3  ;;  %s28_s30 = sadd.s32 1, %s692_s17 }
   0xd   : > { %s25_s5 = ssub.s32 %s696_s18, %s767_s29  ;;  %p35_p7 = scmp.ne.s32.totalorder %s692_s17, %s688_s16 }
   0xe   : > { %p514_p6 = pnand %p513_p4, %p42_p1  ;;  %p26_p8 = scmp.eq.s32.totalorder %s25_s5, 0 }
   0xf   : > { %p36_p9 = scmp.eq.s32.totalorder %s696_s18, 0  ;;  %p41_p10 = scmp.ne.s32.totalorder %s688_s16, %s684_s15 }
  0x10   : > { %516 = dma.hbm_to_vmem [thread:$0]  (!%p514_p6), %s153_s21, 1280, %s155_s25, [#allocation7], %s699_s26, %s699_s26, %s700_s27  }
  0x11   : > { %p128_p11 = scmp.eq.s32.totalorder %s751_s22, 1  ;;  %p783_p12 = por %p42_p1, %p41_p10 }
  0x12   : > { %s779_s6 = scalar_select %p26_p8, %s692_s17, %s28_s30  }
  0x13   : > { %p787_p13 = por %p128_p11, %p35_p7  ;;  %p134_p0 = scmp.eq.s32.totalorder %s485_s28, 1 }
  0x14   : > { %p37_p2 = por %p36_p9, %p35_p7  ;;  %s174_s9 = sand.u32 1, %s692_s17  }
  0x15   : > { %p792_p4 = por %p134_p0, %p41_p10  ;;  %p526_p6 = scmp.lt.s32.totalorder %s696_s18, 2 }
  0x16   : > { %s489_s11 = sshll.u32 %s174_s9, 3  ;;  %s490_s12 = sshll.u32 %s696_s18, 3 }
  0x17   : > { %s182_s19 = scalar_lea.hbm %s878_s0, %s490_s12  ;;  %s178_s21 = scalar_lea.vmem [#allocation3], %s489_s11 }
  0x18   : > { %s184_s20 = sshll.u32 %s182_s19, 4  ;;  %s186_s24 = sshll.u32 %s178_s21, 4  ;;  %s185_s20 = int_to_ptr.hbm [resolvable:$true] %s184_s20  ;;  %s187_s24 = int_to_ptr.vmem [resolvable:$true] %s186_s24 }
  0x19   : > { %p801_p8 = pnand %p526_p6, %p37_p2  ;;  %s175_s26 = scalar_lea.sflag [#allocation4], %s174_s9 }
  0x1a   : > { %s596_s27 = sshra.s32 %s185_s20, 4  ;;  %s603_s11 = scalar_lea.hbm %s878_s0, 16  ;;  %s597_s27 = int_to_ptr.hbm [resolvable:$true] %s596_s27 }
  0x1b   : > { %s598_s28 = scalar_lea.hbm %s597_s27, 8  ;;  %p600_p9 = pneg %p801_p8 }
  0x1c   : > { %p599_p7 = scmp.ne.s32.totalorder %s597_s27, %s598_s28  ;;  %p604_p0 = scmp.lt.s32.totalorder %s597_s27, %s878_s0 }
  0x1d   : > { %p605_p2 = scmp.lt.s32.totalorder %s603_s11, %s598_s28 }
  0x1e   : > { %p601_p10 = pnand %p600_p9, %p599_p7 }
  0x1f   : > { %p606_p6 = por %p605_p2, %p604_p0 }
  0x20   : > { %p602_p11 = pneg %p601_p10 }
  0x22   : > { %p607_p5 = pnand %p606_p6, %p602_p11 }
  0x24   : > { %610 = shalt.err (!%p607_p5)
}
  0x25   : > { %520 = dma.hbm_to_vmem [thread:$0]  (!%p801_p8), %s185_s20, 128, %s187_s24, %s175_s26  }
  0x26   : > { %195 = sbr.rel (%p756_p3) target bundleno = 326 (0x146), region = 36  ;;  %s818_s9 = sand.u32 (!%p756_p3), 1, %s688_s16  }
  0x27   : > { %s492_s14 = sshll.u32 (!%p756_p3), %s818_s9, 3  ;;  %s198_s19 = scalar_lea.sflag (!%p756_p3), [#allocation4], %s818_s9 }
  0x28   : > { %s201_s21 = scalar_lea.vmem (!%p756_p3), [#allocation3], %s492_s14 }
  0x2b   : > { %671 = dma.done.wait (%p783_p12), %s198_s19, 128  }
  0x2c   : > { %673 = vsyncadd (%p783_p12), %s198_s19, 4294967168 }
  0x2d   : > { %675 = dma.done.wait (%p42_p1), [#allocation7], 1280  }
  0x2e   : > { %677 = vsyncadd (%p42_p1), [#allocation7], 4294966016  ;;  %v239_v0 = vld [vmem:[#allocation6 + $0x30] sm:$0xff]  ;;  %v238_v1 = vld [vmem:[#allocation6 + $0x28] sm:$0xff]  ;;  %vm243_vm0 = vcmask 130048   ;;  %v701_v12 = vmov 0  }
  0x2f   : > { %v234_v2 = vld [vmem:[#allocation6 + $0x8] sm:$0xff]  ;;  %281 = vmatpush.msra.mxu2 %v239_v0  ;;  %261 = vmatpush.msra.mxu0 %v238_v1  ;;  %v232_v3 = vld [vmem:[%s201_s21] sm:$0xff]  ;;  %v233_v4 = vld [vmem:[#allocation6] sm:$0xff]  ;;  %vm364_vm1 = vcmask 326656   ;;  %s502_s25 = sshll.u32 %s751_s22, 3  ;;  %s231_s30 = scalar_lea.vmem [#allocation8], %s492_s14 }
  0x30   : > { %v240_v5 = vld [vmem:[#allocation6 + $0x38] sm:$0xff]  ;;  %v242_v6 = vld [vmem:[#allocation6 + $0x48] sm:$0xff]  ;;  %v241_v7 = vld [vmem:[#allocation6 + $0x40] sm:$0xff]  ;;  %565 = vset.pattern.permute.xlu0 %v701_v12  ;;  %s400_s28 = scalar_lea.hbm %s882_s4, %s502_s25  ;;  %s402_s5 = sshll.u32 %s231_s30, 4  ;;  %s403_s5 = int_to_ptr.vmem [resolvable:$true] %s402_s5 }
  0x31   : > { %282 = vmatpush.msra.mxu2 %v234_v2  ;;  %262 = vmatpush.msra.mxu0 %v233_v4  ;;  %v235_v8 = vld [vmem:[#allocation6 + $0x10] sm:$0xff]  ;;  %v237_v9 = vld [vmem:[#allocation6 + $0x20] sm:$0xff]  ;;  %v236_v10 = vld [vmem:[#allocation6 + $0x18] sm:$0xff]  ;;  %s404_s11 = sshll.u32 %s400_s28, 4  ;;  %s390_s12 = scalar_lea.sflag [#allocation5], %s818_s9  ;;  %s405_s11 = int_to_ptr.hbm [resolvable:$true] %s404_s11 }
  0x32   : > { %496 = vmatmul.msk.f32.vlgmr.msra.gmra.mxu2 %vm243_vm0, %v232_v3  ;;  %495 = vmatmul.msk.f32.vlgmr.msra.gmra.mxu0 %vm243_vm0, %v232_v3  ;;  %v358_v11 = vld [vmem:[%s881_s3] sm:$0xff]  ;;  %s640_s13 = sshra.s32 %s405_s11, 4  ;;  %s646_s23 = scalar_lea.hbm %s882_s4, 16  ;;  %s641_s13 = int_to_ptr.hbm [resolvable:$true] %s640_s13 }
  0x33   : > { %301 = vmatpush.msrb.mxu2 %v240_v5  ;;  %341 = vmatpush.msrb.mxu0 %v242_v6  ;;  %v352_v18 = vld [vmem:[%s880_s2] sm:$0xff]  ;;  %s642_s19 = scalar_lea.hbm %s641_s13, 8  ;;  %p647_p12 = scmp.lt.s32.totalorder %s641_s13, %s882_s4 }
  0x34   : > { %321 = vmatpush.msra.mxu3 %v241_v7  ;;  %361 = vperm.xlu0 %565, %v358_v11   ;;  %p643_p1 = scmp.ne.s32.totalorder %s641_s13, %s642_s19  ;;  %p648_p8 = scmp.lt.s32.totalorder %s646_s23, %s642_s19 }
  0x35   : > { %302 = vmatpush.msrb.mxu2 %v235_v8  ;;  %342 = vmatpush.msrb.mxu0 %v237_v9 }
  0x36   : > { %322 = vmatpush.msra.mxu3 %v236_v10  ;;  %p644_p3 = pnand %p643_p1, %p787_p13  ;;  %p649_p7 = por %p648_p8, %p647_p12 }
  0x37   : > { %498 = vmatmul.msk.f32.vlgmr.msra.gmra.mxu3 %vm243_vm0, %v232_v3 }
  0x38   : > { %p645_p5 = pneg %p644_p3 }
  0x3a   : > { %497 = vmatmul.msk.f32.vlgmr.msrb.gmra.mxu2 %vm243_vm0, %v232_v3  ;;  %499 = vmatmul.msk.f32.vlgmr.msrb.gmra.mxu0 %vm243_vm0, %v232_v3  ;;  %p650_p9 = pnand %p649_p7, %p645_p5 }
  0xa6   : > { %v362_v19 = vpop.permute.xlu0 %361 }
  0xaf   : > { %v264_v13 = vpop.f32.mrf.mxu0 }
  0xb5   : > { %v284_v14 = vpop.f32.mrf.mxu2 }
  0xb7   : > { %v344_v15 = vpop.f32.mrf.mxu0 }
  0xb8   : > { %379 = vmatpush.msra.mxu1 %v344_v15 }
  0xba   : > { %v324_v16 = vpop.f32.mrf.mxu3 }
  0xbb   : > { %380 = vmatpush.msra.mxu1 %v324_v16 }
  0xbd   : > { %v304_v17 = vpop.f32.mrf.mxu2 }
  0xbe   : > { %381 = vmatpush.msra.mxu1 %v304_v17 }
  0xc0   : > { %382 = vmatpush.msra.mxu1 %v284_v14 }
  0xc2   : > { %383 = vmatpush.msra.mxu1 %v264_v13 }
  0xc3   : > { %500 = vmatmul.msk.f32.vlgmr.msra.gmra.mxu1 %vm364_vm1, %v352_v18 }
 0x140   : > { %v385_v20 = vpop.f32.mrf.mxu1 }
 0x141   : > { %v386_v21 = vadd.f32 %v385_v20, %v362_v19 }
 0x143   : > { %388 = vst [vmem:[%s231_s30] sm:$0xff] %v386_v21 }
 0x144   : > { %653 = shalt.err (!%p650_p9)
}
 0x145   : > { %511 = dma.vmem_to_hbm [thread:$0]  (%p787_p13), %s403_s5, 128, %s405_s11, %s390_s12  }
 0x146 PF: > { %s416_s9 = sand.u32 1, %s684_s15   ;;  %p888_p10 = scmp.ge.s32.totalorder %s696_s18, 2 }
 0x147   : > { %s417_s20 = scalar_lea.sflag [#allocation5], %s416_s9 }
 0x148   : > { %p522_p11 = pnand %p888_p10, %p792_p4 }
 0x14a   : > { %p523_p0 = pneg %p522_p11 }
 0x14c   : > { %679 = dma.done.wait (%p523_p0), %s417_s20, 128  }
 0x14d   : > { %681 = vsyncadd (%p523_p0), %s417_s20, 4294967168  ;;  %p18_p2 = scmp.ge.s32.totalorder %s767_s29, 4   ;;  %s889_s15 = smov %s688_s16 }
 0x14e   : > { %s890_s16 = smov %s692_s17  ;;  %s891_s17 = smov %s779_s6 }
 0x14f   : > { %s892_s18 = smov %s767_s29  ;;  %20 = sbr.rel (!%p18_p2) target bundleno = 6 (0x6), region = 85 }
 0x154   :  { %423 = vsyncpa [#allocation4], 1 }
 0x155   :  { %425 = vsyncpa [#allocation4 + $0x1], 1 }
 0x156   :  { %426 = vsyncpa [#allocation7], 1 }
 0x157   :  { %427 = vsyncpa [#allocation5], 1 }
 0x158   :  { %429 = vsyncpa [#allocation5 + $0x1], 1 }

</bundles_post_ra>
